<compile_context>
chip_gen: v7x
topology: tpu7x:2x2x1
jax: 0.10.0
libtpu: 0.0.40
codegen_flags: <defaults>
</compile_context>

<pallas_src>
import functools

import jax
import jax.numpy as jnp
from jax.experimental import pallas as pl
from jax.experimental.pallas import tpu as pltpu

_LANES = 1024           # lane-dense last dim (multiple of 128)
_TILE_ROWS_MAX = 1024   # 1024 x 1024 f32 = 4 MiB per tile buffer
_SMALL_N = 1 << 20      # below ~1M elements, plain XLA is strictly faster than a custom call


def _scale_kernel(x_ref, o_ref, *, mult):
    # Pure elementwise multiply; multiplier stays in f32, only the result is cast.
    x = x_ref[...].astype(jnp.float32)
    o_ref[...] = (x * jnp.float32(mult)).astype(o_ref.dtype)


def _round_up(x, m):
    return ((x + m - 1) // m) * m


def _choose_tile_rows(rows):
    """Pick a tile row count: multiple of 8, <= _TILE_ROWS_MAX, dividing `rows`
    evenly when possible, and giving >= 2 grid programs when rows >= 16 (v7x)."""
    if rows < 16:
        return rows  # single full-extent block (allowed even if not a multiple of 8)
    # Prefer an exact divisor of rows that is a multiple of 8 and keeps grid >= 2.
    upper = min(_TILE_ROWS_MAX, rows // 2)
    for tr in range(upper, 7, -1):
        if tr % 8 == 0 and rows % tr == 0:
            return tr
    # Fall back: roughly half the rows, rounded up to a multiple of 8 (grid >= 2,
    # final block may be partial but masked stores keep it correct).
    return min(_TILE_ROWS_MAX, _round_up((rows + 1) // 2, 8))


def scale_vec(affine_t, scale_factor, direction: str, *, min_pallas_elements=_SMALL_N):
    """Pallas implementation of ScaleVec.forward.

    direction == 'Up'   -> affine_t * scale_factor
    direction == 'Down' -> affine_t / scale_factor
    """
    assert direction in ("Down", "Up")

    n = affine_t.size
    scale_is_concrete = not isinstance(scale_factor, jax.core.Tracer)

    # XLA fast path: tiny inputs, unaligned sizes, non-float dtypes, or traced scales.
    # XLA's fused multiply/divide is already at HBM roofline with zero extra passes.
    # TODO(synk): if a traced scale ever needs the Pallas path, pass it via SMEM
    # scalar prefetch instead of folding it into the kernel closure.
    if (n < min_pallas_elements
            or n % _LANES != 0
            or not jnp.issubdtype(affine_t.dtype, jnp.floating)
            or not scale_is_concrete):
        if direction == "Up":
            return affine_t * scale_factor
        return affine_t / scale_factor

    mult = float(scale_factor) if direction == "Up" else 1.0 / float(scale_factor)

    orig_shape = affine_t.shape
    rows = n // _LANES
    x2d = affine_t.reshape(rows, _LANES)  # contiguous reshape -> free bitcast, no copy

    tr = _choose_tile_rows(rows)
    grid = (pl.cdiv(rows, tr),)
    dsize = jnp.dtype(affine_t.dtype).itemsize

    out2d = pl.pallas_call(
        functools.partial(_scale_kernel, mult=mult),
        out_shape=jax.ShapeDtypeStruct((rows, _LANES), affine_t.dtype),
        grid=grid,
        in_specs=[pl.BlockSpec((tr, _LANES), lambda i: (i, 0))],
        out_specs=pl.BlockSpec((tr, _LANES), lambda i: (i, 0)),
        compiler_params=pltpu.CompilerParams(
            dimension_semantics=("parallel",),
            vmem_limit_bytes=32 * 1024 * 1024,
        ),
        cost_estimate=pl.CostEstimate(
            flops=n, transcendentals=0, bytes_accessed=2 * n * dsize),
    )(x2d)

    return out2d.reshape(orig_shape)


if __name__ == "__main__":
    key = jax.random.PRNGKey(0)
    k_small, k_aligned, k_ragged = jax.random.split(key, 3)
    scale_factor = 10.0

    # Typical affine-translation shape -> XLA fast path.
    small = jax.random.normal(k_small, (2, 8, 3), dtype=jnp.float32)
    # Lane-aligned shape (8*1024*3 = 24576 = 24*1024) -> forced through the tiled
    # Pallas path (rows=24, tr=8, grid=(3,)) to exercise the kernel.
    aligned = jax.random.normal(k_aligned, (8, 1024, 3), dtype=jnp.float32)
    # Unaligned shape -> XLA fallback (no pad/slice passes ever emitted).
    ragged = jax.random.normal(k_ragged, (5, 7, 3), dtype=jnp.float32)

    cases = [
        (small, {}),                            # XLA fast path
        (aligned, {"min_pallas_elements": 1}),  # Pallas path
        (ragged, {}),                           # XLA fallback (unaligned)
    ]

    for x, kw in cases:
        out_up = scale_vec(x, scale_factor, "Up", **kw)
        out_down = scale_vec(x, scale_factor, "Down", **kw)
        jax.block_until_ready(out_up)
        jax.block_until_ready(out_down)

        ref_up = x * scale_factor
        ref_down = x / scale_factor
        assert out_up.shape == x.shape and out_up.dtype == x.dtype
        assert out_down.shape == x.shape and out_down.dtype == x.dtype
        assert jnp.allclose(out_up, ref_up, rtol=1e-6, atol=1e-6)
        assert jnp.allclose(out_down, ref_down, rtol=1e-6, atol=1e-6)

    print("KERNEL_OK")
</pallas_src>

<mosaic_0001>
module attributes {stable_mosaic.version = 11 : i64} {
  func.func @_scale_kernel(%arg0: i32, %arg1: memref<8x1024xf32, #tpu.memory_space<vmem>>, %arg2: memref<8x1024xf32, #tpu.memory_space<vmem>>) attributes {dimension_semantics = [#tpu.dimension_semantics<parallel>], iteration_bounds = array<i64: 3>, scalar_prefetch = 0 : i64, scratch_operands = 0 : i64, tpu.core_type = #tpu.core_type<tc>, window_params = [{transform_indices = @transform_0, window_bounds = array<i64: 8, 1024>}, {transform_indices = @transform_1, window_bounds = array<i64: 8, 1024>}]} {
    %c0 = arith.constant 0 : index
    %c0_0 = arith.constant 0 : index
    %0 = vector.load %arg1[%c0, %c0_0] : memref<8x1024xf32, #tpu.memory_space<vmem>>, vector<8x1024xf32>
    %cst = arith.constant 1.000000e+01 : f32
    %1 = vector.broadcast %cst : f32 to vector<8x1024xf32>
    %2 = arith.mulf %0, %1 : vector<8x1024xf32>
    %c0_1 = arith.constant 0 : index
    %c0_2 = arith.constant 0 : index
    %3 = vector.load %arg2[%c0_1, %c0_2] : memref<8x1024xf32, #tpu.memory_space<vmem>>, vector<8x1024xf32>
    tpu.vector_store %arg2[%c0_1, %c0_2], %2 {strides = array<i32>} : memref<8x1024xf32, #tpu.memory_space<vmem>>, vector<8x1024xf32>,
    return
  }
  func.func @transform_0(%arg0: i32) -> (i32, i32) {
    %c0_i32 = arith.constant 0 : i32
    %c0_i32_0 = arith.constant 0 : i32
    return %arg0, %c0_i32 : i32, i32
  }
  func.func @transform_1(%arg0: i32) -> (i32, i32) {
    %c0_i32 = arith.constant 0 : i32
    %c0_i32_0 = arith.constant 0 : i32
    return %arg0, %c0_i32 : i32, i32
  }
}

</mosaic_0001>

<bundles_post_ra>
// kernel: tpu_custom_call.1
= control target key start
LH: loop header
LB: loop body
LE: loop exit
PB: predicated region body
PF: predicated region fallthrough
CT: control target
= control target key end

     0   :  { %6 = vsyncpa [#allocation3], 0  ;;  %s573_s0 = inlined_call_operand.hbm [shape: f32[24,1024], index: 0, kind: input, shape index: {}]   ;;  %s574_s1 = inlined_call_operand.hbm [shape: f32[24,1024], index: 1, kind: output, shape index: {}]  }
   0x1   :  { %8 = vsyncpa [#allocation3 + $0x1], 0 }
   0x2   :  { %9 = vsyncpa [#allocation4], 0 }
   0x3   :  { %11 = vsyncpa [#allocation4 + $0x1], 0  ;;  %s414_s6 = smov 0   ;;  %s416_s7 = smov 0  }
   0x4   :  { %s418_s8 = smov 0   ;;  %s420_s9 = smov 0  }
   0x5 LB: > { %s435_s10 = sadd.s32 4294967295, %s400_s9   ;;  %s242_s11 = sadd.s32 4294967294, %s400_s9   ;;  %s400_s9 = sphi %s420_s9, %s588_s9   ;;  %s396_s8 = sphi %s418_s8, %s587_s8   ;;  %s392_s7 = sphi %s416_s7, %s586_s7   ;;  %s388_s6 = sphi %s414_s6, %s585_s6  }
   0x6   : > { %s439_s12 = sadd.s32 1, %s400_s9   ;;  %s24_s13 = sadd.s32 1, %s396_s8 }
   0x7   : > { %s21_s14 = ssub.s32 %s400_s9, %s439_s12  ;;  %p31_p0 = scmp.ne.s32.totalorder %s396_s8, %s392_s7 }
   0x8   : > { %p22_p1 = scmp.eq.s32.totalorder %s21_s14, 0  ;;  %p32_p2 = scmp.eq.s32.totalorder %s400_s9, 0 }
   0x9   : > { %p37_p3 = scmp.ne.s32.totalorder %s392_s7, %s388_s6  ;;  %p38_p4 = scmp.eq.s32.totalorder %s435_s10, 0 }
   0xa   : > { %s451_s15 = scalar_select %p22_p1, %s396_s8, %s24_s13  }
   0xb   : > { %p453_p5 = por %p32_p2, %p31_p0  ;;  %p457_p6 = por %p38_p4, %p37_p3 }
   0xc   : > { %p61_p7 = scmp.eq.s32.totalorder %s435_s10, 2  ;;  %p67_p8 = scmp.eq.s32.totalorder %s242_s11, 2 }
   0xd   : > { %p270_p9 = scmp.lt.s32.totalorder %s400_s9, 3  ;;  %s87_s20 = sand.u32 1, %s396_s8  }
   0xe   : > { %p463_p10 = por %p61_p7, %p31_p0  ;;  %p467_p11 = por %p67_p8, %p37_p3 }
   0xf   : > { %s256_s21 = sshll.u32 %s400_s9, 10  ;;  %s245_s22 = sshll.u32 %s87_s20, 6 }
  0x10   : > { %s578_s18 = scalar_select %p463_p10, 1, 0 }
  0x11   : > { %s579_s19 = scalar_select %p467_p11, 1, 0 }
  0x12   : > { %s476_s25 = scalar_lea.hbm %s573_s0, %s256_s21  ;;  %s91_s26 = scalar_lea.vmem [#allocation2], %s245_s22 }
  0x13   : > { %s99_s27 = sshll.u32 %s91_s26, 4  ;;  %p480_p12 = pnand %p270_p9, %p453_p5  ;;  %s484_s27 = int_to_ptr.vmem [resolvable:$true] %s99_s27 }
  0x14   : > { %s88_s29 = scalar_lea.sflag [#allocation3], %s87_s20  ;;  %s304_s30 = scalar_lea.hbm %s476_s25, 1024 }
  0x15   : > { %p305_p1 = scmp.ne.s32.totalorder %s476_s25, %s304_s30  ;;  %p306_p2 = pneg %p480_p12 }
  0x16   : > { %s309_s4 = scalar_lea.hbm %s573_s0, 3072  ;;  %p310_p5 = scmp.lt.u32.totalorder %s476_s25, %s573_s0 }
  0x17   : > { %p307_p3 = pnand %p306_p2, %p305_p1  ;;  %p311_p7 = scmp.lt.u32.totalorder %s309_s4, %s304_s30 }
  0x18   : > { %p313_p9 = scmp.lt.u32.totalorder %s304_s30, %s476_s25 }
  0x19   : > { %p308_p4 = pneg %p307_p3  ;;  %p312_p8 = por %p311_p7, %p310_p5 }
  0x1b   : > { %p314_p13 = por %p313_p9, %p312_p8 }
  0x1d   : > { %p315_p0 = pnand %p314_p13, %p308_p4 }
  0x1f   : > { %318 = shalt.err (!%p315_p0)
}
  0x20   : > { %s319_s13 = scalar_lea.vmem %s484_s27, 1024  ;;  %s402_s14 = smov [#allocation2]  }
  0x21   : > { %p320_p1 = scmp.ne.s32.totalorder %s484_s27, %s319_s13  ;;  %s324_s16 = sshll.u32 %s402_s14, 4  ;;  %s325_s16 = int_to_ptr.vmem [resolvable:$false] %s324_s16 }
  0x22   : > { %s326_s20 = scalar_lea.vmem %s325_s16, 2048  ;;  %p327_p10 = scmp.lt.s32.totalorder %s484_s27, %s325_s16 }
  0x23   : > { %p322_p3 = pnand %p320_p1, %p306_p2  ;;  %p328_p5 = scmp.lt.s32.totalorder %s326_s20, %s319_s13 }
  0x25   : > { %p323_p11 = pneg %p322_p3  ;;  %p329_p7 = por %p328_p5, %p327_p10 }
  0x27   : > { %p330_p8 = pnand %p329_p7, %p323_p11 }
  0x29   : > { %333 = shalt.err (!%p330_p8)
}
  0x2a   : > { %265 = dma.hbm_to_vmem [thread:$0]  (!%p480_p12), %s476_s25, 1024, %s484_s27, %s88_s29  }
  0x2b   : > { %p581_p13 = scmp.lt.s32.totalorder %s400_s9, 4  ;;  %p582_p0 = scmp.ge.s32.totalorder %s400_s9, 1 }
  0x2d   : > { %p105_p2 = pnand %p582_p0, %p581_p13 }
  0x2e   : > { %s518_s21 = sand.u32 (!%p105_p2), 1, %s392_s7  }
  0x2f   : > { %108 = sbr.rel (%p105_p2) target bundleno = 82 (0x52), region = 24  ;;  %s249_s22 = sshll.u32 (!%p105_p2), %s518_s21, 6 }
  0x30   : > { %s111_s23 = scalar_lea.sflag (!%p105_p2), [#allocation3], %s518_s21  ;;  %s114_s24 = scalar_lea.vmem (!%p105_p2), [#allocation2], %s249_s22 }
  0x36   : > { %379 = dma.done.wait (%p457_p6), %s111_s23, 1024  }
  0x37   : > { %381 = vsyncadd (%p457_p6), %s111_s23, 4294966272  ;;  %v133_v0 = vld [vmem:[%s114_s24] sm:$0xff]  ;;  %v134_v1 = vld [vmem:[%s114_s24 + $0x8] sm:$0xff]  ;;  %s257_s25 = sshll.u32 %s435_s10, 10  ;;  %s132_s26 = scalar_lea.vmem [#allocation5], %s249_s22 }
  0x38   : > { %v135_v2 = vld [vmem:[%s114_s24 + $0x10] sm:$0xff]  ;;  %s172_s27 = sshll.u32 %s132_s26, 4  ;;  %v141_v3 = vmul.f32 10.0, %v133_v0  ;;  %v142_v4 = vmul.f32 10.0, %v134_v1  ;;  %v136_v6 = vld [vmem:[%s114_s24 + $0x18] sm:$0xff]  ;;  %v137_v7 = vld [vmem:[%s114_s24 + $0x20] sm:$0xff]  ;;  %s530_s28 = scalar_lea.hbm %s574_s1, %s257_s25  ;;  %s532_s27 = int_to_ptr.vmem [resolvable:$true] %s172_s27 }
  0x39   : > { %v143_v5 = vmul.f32 10.0, %v135_v2  ;;  %v138_v8 = vld [vmem:[%s114_s24 + $0x28] sm:$0xff]  ;;  %v144_v9 = vmul.f32 10.0, %v136_v6  ;;  %v145_v10 = vmul.f32 10.0, %v137_v7  ;;  %v139_v12 = vld [vmem:[%s114_s24 + $0x30] sm:$0xff]  ;;  %v140_v13 = vld [vmem:[%s114_s24 + $0x38] sm:$0xff] }
  0x3a   : > { %v146_v11 = vmul.f32 10.0, %v138_v8  ;;  %149 = vst [vmem:[%s132_s26] sm:$0xff] %v141_v3  ;;  %150 = vst [vmem:[%s132_s26 + $0x8] sm:$0xff] %v142_v4  ;;  %v147_v14 = vmul.f32 10.0, %v139_v12  ;;  %v148_v15 = vmul.f32 10.0, %v140_v13  ;;  %s158_s29 = scalar_lea.sflag [#allocation4], %s518_s21  ;;  %s334_s30 = scalar_lea.vmem %s532_s27, 1024 }
  0x3b   : > { %151 = vst [vmem:[%s132_s26 + $0x10] sm:$0xff] %v143_v5  ;;  %152 = vst [vmem:[%s132_s26 + $0x18] sm:$0xff] %v144_v9  ;;  %p335_p6 = scmp.ne.s32.totalorder %s532_s27, %s334_s30  ;;  %p583_p10 = scmp.ne.s32.totalorder %s578_s18, 0 }
  0x3c   : > { %153 = vst [vmem:[%s132_s26 + $0x20] sm:$0xff] %v145_v10  ;;  %154 = vst [vmem:[%s132_s26 + $0x28] sm:$0xff] %v146_v11  ;;  %s403_s2 = smov [#allocation5]  }
  0x3d   : > { %155 = vst [vmem:[%s132_s26 + $0x30] sm:$0xff] %v147_v14  ;;  %156 = vst [vmem:[%s132_s26 + $0x38] sm:$0xff] %v148_v15  ;;  %p336_p11 = pnand %p335_p6, %p583_p10  ;;  %s338_s3 = sshll.u32 %s403_s2, 4  ;;  %s339_s3 = int_to_ptr.vmem [resolvable:$false] %s338_s3 }
  0x3e   : > { %s340_s4 = scalar_lea.vmem %s339_s3, 2048  ;;  %p341_p4 = scmp.lt.s32.totalorder %s532_s27, %s339_s3 }
  0x3f   : > { %p337_p12 = pneg %p336_p11  ;;  %p342_p9 = scmp.lt.s32.totalorder %s340_s4, %s334_s30 }
  0x41   : > { %p343_p1 = por %p342_p9, %p341_p4 }
  0x43   : > { %p344_p3 = pnand %p343_p1, %p337_p12 }
  0x45   : > { %347 = shalt.err (!%p344_p3)
}
  0x46   : > { %s348_s5 = scalar_lea.hbm %s530_s28, 1024  ;;  %s352_s14 = scalar_lea.hbm %s574_s1, 3072 }
  0x47   : > { %p349_p5 = scmp.ne.s32.totalorder %s530_s28, %s348_s5  ;;  %p353_p13 = scmp.lt.u32.totalorder %s530_s28, %s574_s1 }
  0x48   : > { %p354_p0 = scmp.lt.u32.totalorder %s352_s14, %s348_s5  ;;  %p356_p6 = scmp.lt.u32.totalorder %s348_s5, %s530_s28 }
  0x49   : > { %p350_p7 = pnand %p349_p5, %p583_p10 }
  0x4a   : > { %p355_p2 = por %p354_p0, %p353_p13 }
  0x4b   : > { %p351_p8 = pneg %p350_p7 }
  0x4c   : > { %p357_p11 = por %p356_p6, %p355_p2 }
  0x4e   : > { %p358_p12 = pnand %p357_p11, %p351_p8 }
  0x50   : > { %361 = shalt.err (!%p358_p12)
}
  0x51   : > { %260 = dma.vmem_to_hbm [thread:$0]  (%p583_p10), %s532_s27, 1024, %s530_s28, %s158_s29  }
  0x52 PF: > { %p271_p4 = scmp.ge.s32.totalorder %s400_s9, 2  ;;  %s184_s21 = sand.u32 1, %s388_s6  }
  0x53   : > { %p584_p9 = scmp.ne.s32.totalorder %s579_s19, 0  ;;  %s185_s22 = scalar_lea.sflag [#allocation4], %s184_s21 }
  0x55   : > { %p267_p1 = pnand %p271_p4, %p584_p9 }
  0x57   : > { %383 = dma.done.wait (!%p267_p1), %s185_s22, 1024  }
  0x58   : > { %385 = vsyncadd (!%p267_p1), %s185_s22, 4294966272  ;;  %p14_p3 = scmp.ge.s32.totalorder %s439_s12, 5   ;;  %s585_s6 = smov %s392_s7 }
  0x59   : > { %s586_s7 = smov %s396_s8  ;;  %s587_s8 = smov %s451_s15 }
  0x5a   : > { %s588_s9 = smov %s439_s12  ;;  %16 = sbr.rel (!%p14_p3) target bundleno = 5 (0x5), region = 69 }
  0x61   :  { %190 = vsyncpa [#allocation3], 1 }
  0x62   :  { %192 = vsyncpa [#allocation3 + $0x1], 1 }
  0x63   :  { %193 = vsyncpa [#allocation4], 1 }
  0x64   :  { %195 = vsyncpa [#allocation4 + $0x1], 1 }

</bundles_post_ra>
